<compile_context>
chip_gen: v5e
topology: v5e:2x2
jax: 0.10.0
libtpu: 0.0.40
codegen_flags: <defaults>
</compile_context>

<pallas_src>
import functools

import jax
import jax.numpy as jnp
from jax.experimental import pallas as pl
from jax.experimental.pallas import tpu as pltpu

NEG_SLOPE = 0.01   # PyTorch nn.LeakyReLU default
BN_EPS = 1e-5      # PyTorch BatchNorm1d default
HIDDEN = 256


def _leaky_relu(x):
    # exact for 0 < slope < 1, and one VALU op cheaper than compare+select
    return jnp.maximum(x, NEG_SLOPE * x)


def simplenn_kernel(x_ref, w1_ref, b1_ref, w2_ref, b2_ref, w3_ref, wr3_ref, b3_ref,
                    o_ref, *, stage1_dtype):
    x = x_ref[...]                                   # (TB, D) f32 tile
    xb = x.astype(jnp.bfloat16)                      # in-kernel cast for the MXU

    # fc1 (bn1 folded) -> leaky_relu.  Epilogue in bf16 on v6e/v7x, f32 on v5e.
    acc1 = jnp.dot(xb, w1_ref[...], preferred_element_type=jnp.float32)
    h = acc1.astype(stage1_dtype) + b1_ref[...].astype(stage1_dtype)
    h = _leaky_relu(h)
    # dropout(p=0.2) -> identity in eval mode

    # fc2 (bn2 folded) -> leaky_relu, kept in f32 (h2 only feeds the fc3 reduce).
    acc2 = jnp.dot(h.astype(jnp.bfloat16), w2_ref[...],
                   preferred_element_type=jnp.float32)
    h2 = acc2 + b2_ref[...]
    h2 = _leaky_relu(h2)
    # dropout(p=0.2) -> identity in eval mode

    # fc3 with the residual branch folded through it:
    #   out = h2 @ w3 + x @ (wr @ w3) + (br @ w3 + b3)
    out = jnp.sum(h2 * w3_ref[...], axis=-1, keepdims=True)          # (TB, 1)
    out = out + jnp.sum(x * wr3_ref[...], axis=-1, keepdims=True)    # residual
    out = out + b3_ref[...]
    o_ref[...] = out.astype(o_ref.dtype)


def _fold_bn(w, b, g, be, m, v):
    """Fold eval-mode BatchNorm into the preceding Linear (exact in eval mode)."""
    s = g * jax.lax.rsqrt(v + BN_EPS)                # (1, H)
    return w * s, (b - m) * s + be


def prepare_params(p):
    """Fold BN into fc1/fc2, push the residual branch through fc3, cast MXU weights."""
    w1p, b1p = _fold_bn(p["w1"], p["b1"], p["g1"], p["be1"], p["m1"], p["v1"])
    w2p, b2p = _fold_bn(p["w2"], p["b2"], p["g2"], p["be2"], p["m2"], p["v2"])
    w3 = p["w3"]                                     # (H, 1)
    wr3 = p["wr"] @ w3                               # (D, 1)  = wr @ w3
    b3s = p["br"] @ w3 + p["b3"]                     # (1, 1)  = br @ w3 + b3
    return dict(
        w1=w1p.astype(jnp.bfloat16),                 # (D, H)
        b1=b1p.astype(jnp.float32),                  # (1, H)
        w2=w2p.astype(jnp.bfloat16),                 # (H, H)
        b2=b2p.astype(jnp.float32),                  # (1, H)
        w3=w3.reshape(1, HIDDEN).astype(jnp.float32),    # (1, H) row for lane reduce
        wr3=wr3.reshape(1, -1).astype(jnp.float32),      # (1, D) row for lane reduce
        b3=b3s.reshape(1, 1).astype(jnp.float32),        # (1, 1)
    )


def _round_up(a, m):
    return ((a + m - 1) // m) * m


def _tpu_generation():
    try:
        kind = jax.devices()[0].device_kind.lower()
    except Exception:
        return 0
    for g in (7, 6, 5, 4):
        if f"v{g}" in kind:
            return g
    return 0


def _tiling_config():
    gen = _tpu_generation()
    if gen >= 7:        # 64 MiB VMEM, 2 TensorCores
        return dict(max_tb=2048, vmem=40 * 1024 * 1024, min_steps=2,
                    stage1_dtype=jnp.bfloat16)
    if gen == 6:        # 128 MiB VMEM, bf16 VPU
        return dict(max_tb=4096, vmem=64 * 1024 * 1024, min_steps=1,
                    stage1_dtype=jnp.bfloat16)
    if gen == 5:        # 128 MiB VMEM, no bf16 VPU -> keep f32 epilogue
        return dict(max_tb=8192, vmem=64 * 1024 * 1024, min_steps=1,
                    stage1_dtype=jnp.float32)
    return dict(max_tb=2048, vmem=32 * 1024 * 1024, min_steps=1,
                stage1_dtype=jnp.float32)


def simplenn_forward(x, prepared):
    B, D = x.shape
    H = HIDDEN
    cfg = _tiling_config()

    # Tile the batch so padding waste stays below one tile, with >=2 (even) steps
    # on v7x so both TensorCores are used.
    b8 = _round_up(max(B, 1), 8)
    steps = max(cfg["min_steps"], pl.cdiv(b8, cfg["max_tb"]))
    if cfg["min_steps"] > 1 and steps > 1:
        steps = ((steps + 1) // 2) * 2               # even step count for 2 TCs
    tb = _round_up(pl.cdiv(b8, steps), 8)
    steps = pl.cdiv(b8, tb)
    b_pad = steps * tb
    if b_pad != B:
        x = jnp.pad(x, ((0, b_pad - B), (0, 0)))     # zero rows, sliced off below

    resident = lambda i: (0, 0)   # weights/biases: same block every step -> stay in VMEM
    in_specs = [
        pl.BlockSpec((tb, D), lambda i: (i, 0)),     # x tile (pipelined, f32)
        pl.BlockSpec((D, H), resident),              # w1' (bn1 folded, bf16)
        pl.BlockSpec((1, H), resident),              # b1'
        pl.BlockSpec((H, H), resident),              # w2' (bn2 folded, bf16)
        pl.BlockSpec((1, H), resident),              # b2'
        pl.BlockSpec((1, H), resident),              # w3 row
        pl.BlockSpec((1, D), resident),              # wr@w3 row (folded residual)
        pl.BlockSpec((1, 1), resident),              # br@w3 + b3
    ]
    out_specs = pl.BlockSpec((tb, 1), lambda i: (i, 0))

    out = pl.pallas_call(
        functools.partial(simplenn_kernel, stage1_dtype=cfg["stage1_dtype"]),
        out_shape=jax.ShapeDtypeStruct((b_pad, 1), jnp.float32),
        grid=(steps,),
        in_specs=in_specs,
        out_specs=out_specs,
        compiler_params=pltpu.CompilerParams(
            dimension_semantics=("parallel",),
            vmem_limit_bytes=cfg["vmem"],
        ),
    )(x, prepared["w1"], prepared["b1"], prepared["w2"], prepared["b2"],
      prepared["w3"], prepared["wr3"], prepared["b3"])

    return out[:B]


def init_params(key, input_dim, hidden=HIDDEN):
    ks = jax.random.split(key, 8)

    def linear_init(k, fan_in, fan_out):
        # mimic PyTorch nn.Linear default init: U(-1/sqrt(fan_in), 1/sqrt(fan_in))
        bound = 1.0 / jnp.sqrt(fan_in)
        kw, kb = jax.random.split(k)
        w = jax.random.uniform(kw, (fan_in, fan_out), jnp.float32, -bound, bound)
        b = jax.random.uniform(kb, (1, fan_out), jnp.float32, -bound, bound)
        return w, b

    w1, b1 = linear_init(ks[0], input_dim, hidden)
    w2, b2 = linear_init(ks[1], hidden, hidden)
    wr, br = linear_init(ks[2], input_dim, hidden)
    w3, b3 = linear_init(ks[3], hidden, 1)

    # BatchNorm1d params / running stats (deterministic, eval-mode stats)
    g1 = jnp.ones((1, hidden), jnp.float32)
    be1 = jnp.zeros((1, hidden), jnp.float32)
    m1 = 0.1 * jax.random.normal(ks[4], (1, hidden), jnp.float32)
    v1 = 1.0 + 0.05 * jax.random.uniform(ks[5], (1, hidden), jnp.float32)

    g2 = jnp.ones((1, hidden), jnp.float32)
    be2 = jnp.zeros((1, hidden), jnp.float32)
    m2 = 0.1 * jax.random.normal(ks[6], (1, hidden), jnp.float32)
    v2 = 1.0 + 0.05 * jax.random.uniform(ks[7], (1, hidden), jnp.float32)

    return dict(
        w1=w1, b1=b1, g1=g1, be1=be1, m1=m1, v1=v1,
        w2=w2, b2=b2, g2=g2, be2=be2, m2=m2, v2=v2,
        wr=wr, br=br, w3=w3, b3=b3,
    )


def reference_forward(x, p):
    def lrelu(v):
        return jnp.where(v >= 0, v, NEG_SLOPE * v)
    identity = x @ p["wr"] + p["br"]
    h = x @ p["w1"] + p["b1"]
    h = (h - p["m1"]) / jnp.sqrt(p["v1"] + BN_EPS) * p["g1"] + p["be1"]
    h = lrelu(h)
    h = h @ p["w2"] + p["b2"]
    h = (h - p["m2"]) / jnp.sqrt(p["v2"] + BN_EPS) * p["g2"] + p["be2"]
    h = lrelu(h)
    h = h + identity
    return h @ p["w3"] + p["b3"]


if __name__ == "__main__":
    key = jax.random.PRNGKey(0)
    k_x, k_p = jax.random.split(key)

    B, INPUT_DIM = 8, 32
    x = jax.random.normal(k_x, (B, INPUT_DIM), jnp.float32)
    params = init_params(k_p, INPUT_DIM)
    prepared = prepare_params(params)

    out = simplenn_forward(x, prepared)
    out = jax.block_until_ready(out)

    ref = reference_forward(x, params)
    assert out.shape == (B, 1), out.shape
    # bf16 matmul inputs (and bf16 stage-1 epilogue on v6e/v7x) -> loosened tolerance
    assert jnp.allclose(out, ref, atol=5e-2, rtol=5e-2), "mismatch vs JAX reference"

    print("KERNEL_OK")
</pallas_src>

<mosaic_0001>
module attributes {stable_mosaic.version = 11 : i64} {
  func.func @simplenn_kernel(%arg0: i32, %arg1: memref<8x32xf32, #tpu.memory_space<vmem>>, %arg2: memref<32x256xbf16, #tpu.memory_space<vmem>>, %arg3: memref<1x256xf32, #tpu.memory_space<vmem>>, %arg4: memref<256x256xbf16, #tpu.memory_space<vmem>>, %arg5: memref<1x256xf32, #tpu.memory_space<vmem>>, %arg6: memref<1x256xf32, #tpu.memory_space<vmem>>, %arg7: memref<1x32xf32, #tpu.memory_space<vmem>>, %arg8: memref<1x1xf32, #tpu.memory_space<vmem>>, %arg9: memref<8x1xf32, #tpu.memory_space<vmem>>) attributes {dimension_semantics = [#tpu.dimension_semantics<parallel>], iteration_bounds = array<i64: 1>, scalar_prefetch = 0 : i64, scratch_operands = 0 : i64, tpu.core_type = #tpu.core_type<tc>, window_params = [{transform_indices = @transform_0, window_bounds = array<i64: 8, 32>}, {pipeline_mode = #tpu.pipeline_mode<synchronous>, transform_indices = @transform_1, window_bounds = array<i64: 32, 256>}, {pipeline_mode = #tpu.pipeline_mode<synchronous>, transform_indices = @transform_2, window_bounds = array<i64: 1, 256>}, {pipeline_mode = #tpu.pipeline_mode<synchronous>, transform_indices = @transform_3, window_bounds = array<i64: 256, 256>}, {pipeline_mode = #tpu.pipeline_mode<synchronous>, transform_indices = @transform_4, window_bounds = array<i64: 1, 256>}, {pipeline_mode = #tpu.pipeline_mode<synchronous>, transform_indices = @transform_5, window_bounds = array<i64: 1, 256>}, {pipeline_mode = #tpu.pipeline_mode<synchronous>, transform_indices = @transform_6, window_bounds = array<i64: 1, 32>}, {pipeline_mode = #tpu.pipeline_mode<synchronous>, transform_indices = @transform_7, window_bounds = array<i64: 1, 1>}, {transform_indices = @transform_8, window_bounds = array<i64: 8, 1>}]} {
    %c0 = arith.constant 0 : index
    %c0_0 = arith.constant 0 : index
    %0 = vector.load %arg1[%c0, %c0_0] : memref<8x32xf32, #tpu.memory_space<vmem>>, vector<8x32xf32>
    %1 = arith.truncf %0 : vector<8x32xf32> to vector<8x32xbf16>
    %c0_1 = arith.constant 0 : index
    %c0_2 = arith.constant 0 : index
    %2 = vector.load %arg2[%c0_1, %c0_2] : memref<32x256xbf16, #tpu.memory_space<vmem>>, vector<32x256xbf16>
    %cst = arith.constant dense<0.000000e+00> : vector<8x256xf32>
    %3 = tpu.matmul %1, %2, %cst {dimension_numbers = #tpu.dot_dimension_numbers<[1], [0], [0], [1], [0, 0, 1, 1], [], []>} : vector<8x32xbf16>, vector<32x256xbf16>, vector<8x256xf32> -> vector<8x256xf32>
    %c0_3 = arith.constant 0 : index
    %c0_4 = arith.constant 0 : index
    %4 = vector.load %arg3[%c0_3, %c0_4] : memref<1x256xf32, #tpu.memory_space<vmem>>, vector<1x256xf32>
    %5 = vector.broadcast %4 : vector<1x256xf32> to vector<8x256xf32>
    %6 = arith.addf %3, %5 : vector<8x256xf32>
    %cst_5 = arith.constant 0.00999999977 : f32
    %7 = vector.broadcast %cst_5 : f32 to vector<8x256xf32>
    %8 = arith.mulf %7, %6 : vector<8x256xf32>
    %9 = arith.maximumf %6, %8 : vector<8x256xf32>
    %10 = arith.truncf %9 : vector<8x256xf32> to vector<8x256xbf16>
    %c0_6 = arith.constant 0 : index
    %c0_7 = arith.constant 0 : index
    %11 = vector.load %arg4[%c0_6, %c0_7] : memref<256x256xbf16, #tpu.memory_space<vmem>>, vector<256x256xbf16>
    %cst_8 = arith.constant dense<0.000000e+00> : vector<8x256xf32>
    %12 = tpu.matmul %10, %11, %cst_8 {dimension_numbers = #tpu.dot_dimension_numbers<[1], [0], [0], [1], [0, 0, 1, 1], [], []>} : vector<8x256xbf16>, vector<256x256xbf16>, vector<8x256xf32> -> vector<8x256xf32>
    %c0_9 = arith.constant 0 : index
    %c0_10 = arith.constant 0 : index
    %13 = vector.load %arg5[%c0_9, %c0_10] : memref<1x256xf32, #tpu.memory_space<vmem>>, vector<1x256xf32>
    %14 = vector.broadcast %13 : vector<1x256xf32> to vector<8x256xf32>
    %15 = arith.addf %12, %14 : vector<8x256xf32>
    %cst_11 = arith.constant 0.00999999977 : f32
    %16 = vector.broadcast %cst_11 : f32 to vector<8x256xf32>
    %17 = arith.mulf %16, %15 : vector<8x256xf32>
    %18 = arith.maximumf %15, %17 : vector<8x256xf32>
    %c0_12 = arith.constant 0 : index
    %c0_13 = arith.constant 0 : index
    %19 = vector.load %arg6[%c0_12, %c0_13] : memref<1x256xf32, #tpu.memory_space<vmem>>, vector<1x256xf32>
    %20 = vector.broadcast %19 : vector<1x256xf32> to vector<8x256xf32>
    %21 = arith.mulf %18, %20 : vector<8x256xf32>
    %cst_14 = arith.constant dense<0.000000e+00> : vector<8xf32>
    %22 = vector.multi_reduction <add>, %21, %cst_14 [1] : vector<8x256xf32> to vector<8xf32>
    %23 = vector.shape_cast %22 : vector<8xf32> to vector<8x1xf32>
    %c0_15 = arith.constant 0 : index
    %c0_16 = arith.constant 0 : index
    %24 = vector.load %arg7[%c0_15, %c0_16] : memref<1x32xf32, #tpu.memory_space<vmem>>, vector<1x32xf32>
    %25 = vector.broadcast %24 : vector<1x32xf32> to vector<8x32xf32>
    %26 = arith.mulf %0, %25 : vector<8x32xf32>
    %cst_17 = arith.constant dense<0.000000e+00> : vector<8xf32>
    %27 = vector.multi_reduction <add>, %26, %cst_17 [1] : vector<8x32xf32> to vector<8xf32>
    %28 = vector.shape_cast %27 : vector<8xf32> to vector<8x1xf32>
    %29 = arith.addf %23, %28 : vector<8x1xf32>
    %c0_18 = arith.constant 0 : index
    %c0_19 = arith.constant 0 : index
    %30 = vector.load %arg8[%c0_18, %c0_19] : memref<1x1xf32, #tpu.memory_space<vmem>>, vector<1x1xf32>
    %31 = vector.broadcast %30 : vector<1x1xf32> to vector<8x1xf32>
    %32 = arith.addf %29, %31 : vector<8x1xf32>
    %c0_20 = arith.constant 0 : index
    %c0_21 = arith.constant 0 : index
    %33 = vector.load %arg9[%c0_20, %c0_21] : memref<8x1xf32, #tpu.memory_space<vmem>>, vector<8x1xf32>
    tpu.vector_store %arg9[%c0_20, %c0_21], %32 {strides = array<i32>} : memref<8x1xf32, #tpu.memory_space<vmem>>, vector<8x1xf32>,
    return
  }
  func.func @transform_0(%arg0: i32) -> (i32, i32) {
    %c0_i32 = arith.constant 0 : i32
    %c0_i32_0 = arith.constant 0 : i32
    return %arg0, %c0_i32 : i32, i32
  }
  func.func @transform_1(%arg0: i32) -> (i32, i32) {
    %c0_i32 = arith.constant 0 : i32
    %c0_i32_0 = arith.constant 0 : i32
    %c0_i32_1 = arith.constant 0 : i32
    return %c0_i32, %c0_i32_0 : i32, i32
  }
  func.func @transform_2(%arg0: i32) -> (i32, i32) {
    %c0_i32 = arith.constant 0 : i32
    %c0_i32_0 = arith.constant 0 : i32
    %c0_i32_1 = arith.constant 0 : i32
    return %c0_i32, %c0_i32_0 : i32, i32
  }
  func.func @transform_3(%arg0: i32) -> (i32, i32) {
    %c0_i32 = arith.constant 0 : i32
    %c0_i32_0 = arith.constant 0 : i32
    %c0_i32_1 = arith.constant 0 : i32
    return %c0_i32, %c0_i32_0 : i32, i32
  }
  func.func @transform_4(%arg0: i32) -> (i32, i32) {
    %c0_i32 = arith.constant 0 : i32
    %c0_i32_0 = arith.constant 0 : i32
    %c0_i32_1 = arith.constant 0 : i32
    return %c0_i32, %c0_i32_0 : i32, i32
  }
  func.func @transform_5(%arg0: i32) -> (i32, i32) {
    %c0_i32 = arith.constant 0 : i32
    %c0_i32_0 = arith.constant 0 : i32
    %c0_i32_1 = arith.constant 0 : i32
    return %c0_i32, %c0_i32_0 : i32, i32
  }
  func.func @transform_6(%arg0: i32) -> (i32, i32) {
    %c0_i32 = arith.constant 0 : i32
    %c0_i32_0 = arith.constant 0 : i32
    %c0_i32_1 = arith.constant 0 : i32
    return %c0_i32, %c0_i32_0 : i32, i32
  }
  func.func @transform_7(%arg0: i32) -> (i32, i32) {
    %c0_i32 = arith.constant 0 : i32
    %c0_i32_0 = arith.constant 0 : i32
    %c0_i32_1 = arith.constant 0 : i32
    return %c0_i32, %c0_i32_0 : i32, i32
  }
  func.func @transform_8(%arg0: i32) -> (i32, i32) {
    %c0_i32 = arith.constant 0 : i32
    %c0_i32_0 = arith.constant 0 : i32
    return %arg0, %c0_i32 : i32, i32
  }
}

</mosaic_0001>

<bundles_post_ra>
// kernel: tpu_custom_call.1
= control target key start
LH: loop header
LB: loop body
LE: loop exit
PB: predicated region body
PF: predicated region fallthrough
CT: control target
= control target key end

     0   :  { %s782_s0 = inlined_call_operand.hbm [shape: f32[8,32], index: 0, kind: input, shape index: {}]   ;;  %s783_s1 = inlined_call_operand.hbm [shape: bf16[32,256], index: 1, kind: input, shape index: {}]   ;;  %s784_s2 = inlined_call_operand.vmem [shape: f32[1,256], index: 2, kind: input, shape index: {}]   ;;  %s785_s3 = inlined_call_operand.hbm [shape: bf16[256,256], index: 3, kind: input, shape index: {}]   ;;  %s786_s4 = inlined_call_operand.vmem [shape: f32[1,256], index: 4, kind: input, shape index: {}]   ;;  %s787_s5 = inlined_call_operand.vmem [shape: f32[1,256], index: 5, kind: input, shape index: {}]   ;;  %s788_s6 = inlined_call_operand.vmem [shape: f32[1,32], index: 6, kind: input, shape index: {}]   ;;  %s789_s7 = inlined_call_operand.<no memory space> [shape: f32[1,1], index: 7, kind: input, shape index: {}]   ;;  %s790_s8 = inlined_call_operand.vmem [shape: f32[8,1], index: 8, kind: output, shape index: {}]  }
   0x1   :  { %v13_v0 = vstv %s789_s7 }
   0x2   :  { %14 = vst [vmem:[#allocation2] sm:$0x1] %v13_v0 }
   0x3   :  { %15 = vsyncpa [#allocation4], 0 }
   0x4   :  { %16 = vsyncpa [#allocation6], 0  ;;  %s32_s9 = sshll.u32 %s783_s1, 4  ;;  %s697_s10 = smov [#allocation5]   ;;  %s33_s9 = int_to_ptr.hbm [resolvable:$true] %s32_s9 }
   0x5   :  { %s34_s11 = sshll.u32 %s697_s10, 4  ;;  %s22_s14 = sshll.u32 %s782_s0, 4  ;;  %s35_s11 = int_to_ptr.vmem [resolvable:$true] %s34_s11  ;;  %s23_s14 = int_to_ptr.hbm [resolvable:$true] %s22_s14 }
   0x6   :  { %s698_s15 = smov 128   ;;  %s699_s16 = smov 8  }
   0x7   :  { %40 = dma.hbm_to_vmem [thread:$0]  %s33_s9, 512, %s35_s11, [#allocation6], %s698_s15, %s698_s15, %s699_s16  }
   0x8   :  { %s700_s7 = smov [#allocation3]   ;;  %s47_s20 = sshll.u32 %s785_s3, 4  ;;  %s48_s20 = int_to_ptr.hbm [resolvable:$true] %s47_s20 }
   0x9   :  { %s24_s17 = sshll.u32 %s700_s7, 4  ;;  %s701_s1 = smov [#allocation7]   ;;  %s25_s17 = int_to_ptr.vmem [resolvable:$true] %s24_s17 }
   0xa   :  { %27 = dma.hbm_to_vmem [thread:$0]  %s23_s14, 128, %s25_s17, [#allocation4]  }
   0xb   :  { %s49_s21 = sshll.u32 %s701_s1, 4  ;;  %s50_s21 = int_to_ptr.vmem [resolvable:$true] %s49_s21 }
   0xc   :  { %55 = dma.hbm_to_vmem [thread:$0]  %s48_s20, 4096, %s50_s21, [#allocation6], %s698_s15, %s698_s15, %s699_s16  }
   0xd   :  { %693 = dma.done.wait [#allocation4], 128  }
   0xe   :  { %694 = vsyncadd [#allocation4], 4294967168 }
   0xf   :  { %695 = dma.done.wait [#allocation6], 4608  }
  0x10   :  { %696 = vsyncadd [#allocation6], 4294962688  ;;  %v442_v1 = vld [vmem:[#allocation5 + $0x10] sm:$0xf]  ;;  %v581_v2 = vld [vmem:[#allocation5 + $0x14] sm:$0xf0] }
  0x11   :  { %v580_v3 = vld [vmem:[#allocation5 + $0x14] sm:$0xf]  ;;  %v443_v4 = vor.u32 %v581_v2, %v442_v1  ;;  %v444_v5 = vld [vmem:[#allocation5 + $0x18] sm:$0xf0]  ;;  %v434_v6 = vld [vmem:[#allocation5] sm:$0xf] }
  0x12   :  { %v579_v7 = vld [vmem:[#allocation5 + $0x4] sm:$0xf0]  ;;  %v447_v8 = vor.u32 %v580_v3, %v444_v5  ;;  %v578_v9 = vld [vmem:[#allocation5 + $0x4] sm:$0xf]  ;;  %v436_v10 = vld [vmem:[#allocation5 + $0x8] sm:$0xf0] }
  0x13   :  { %v759_v11 = vld [vmem:[#allocation3] sm:$0xff]  ;;  %vm109_vm0 = vcmask 261120   ;;  %119 = vmatpush.bf16.msra.mxu0 %v443_v4  ;;  %v435_v12 = vor.u32 %v579_v7, %v434_v6  ;;  %v508_v13 = vld [vmem:[#allocation7 + $0x70] sm:$0xf]  ;;  %v439_v16 = vor.u32 %v578_v9, %v436_v10  ;;  %v596_v19 = vld [vmem:[#allocation7 + $0x74] sm:$0xf] }
  0x14   :  { %v597_v14 = vld [vmem:[#allocation7 + $0x74] sm:$0xf0]  ;;  %v572_v15 = vld [vmem:[#allocation7 + $0xf0] sm:$0xf]  ;;  %132 = vmatpush.bf16.msra.mxu1 %v447_v8  ;;  %v510_v20 = vld [vmem:[#allocation7 + $0x78] sm:$0xf0]  ;;  %v78_v26 = vpack.c.bf16 %v759_v11, %v759_v11 }
  0x15   :  { %v509_v17 = vor.u32 %v597_v14, %v508_v13  ;;  %v613_v18 = vld [vmem:[#allocation7 + $0xf4] sm:$0xf0]  ;;  %v513_v22 = vor.u32 %v596_v19, %v510_v20  ;;  %v612_v23 = vld [vmem:[#allocation7 + $0xf4] sm:$0xf]  ;;  %v574_v24 = vld [vmem:[#allocation7 + $0xf8] sm:$0xf0] }
  0x16   :  { %v573_v21 = vor.u32 %v613_v18, %v572_v15  ;;  %v500_v25 = vld [vmem:[#allocation7 + $0x60] sm:$0xf]  ;;  %v577_v27 = vor.u32 %v612_v23, %v574_v24  ;;  %v595_v28 = vld [vmem:[#allocation7 + $0x64] sm:$0xf0]  ;;  %v594_v33 = vld [vmem:[#allocation7 + $0x64] sm:$0xf] }
  0x17   :  { %343 = vmatpush.bf16.msra.mxu2 %v509_v17  ;;  %v564_v29 = vld [vmem:[#allocation7 + $0xe0] sm:$0xf]  ;;  %v611_v30 = vld [vmem:[#allocation7 + $0xe4] sm:$0xf0]  ;;  %120 = vmatpush.bf16.msra.mxu0 %v435_v12  ;;  %v501_v31 = vor.u32 %v595_v28, %v500_v25  ;;  %v502_v34 = vld [vmem:[#allocation7 + $0x68] sm:$0xf0] }
  0x18   :  { %356 = vmatpush.bf16.msra.mxu3 %v573_v21  ;;  %v565_v32 = vor.u32 %v611_v30, %v564_v29  ;;  %v610_v35 = vld [vmem:[#allocation7 + $0xe4] sm:$0xf]  ;;  %133 = vmatpush.bf16.msra.mxu1 %v439_v16  ;;  %v505_v36 = vor.u32 %v594_v33, %v502_v34  ;;  %v566_v37 = vld [vmem:[#allocation7 + $0xe8] sm:$0xf0]  ;;  %v492_v38 = vld [vmem:[#allocation7 + $0x50] sm:$0xf] }
  0x19   :  { %v593_v39 = vld [vmem:[#allocation7 + $0x54] sm:$0xf0]  ;;  %v569_v40 = vor.u32 %v610_v35, %v566_v37  ;;  %v556_v41 = vld [vmem:[#allocation7 + $0xd0] sm:$0xf]  ;;  %v592_v43 = vld [vmem:[#allocation7 + $0x54] sm:$0xf] }
  0x1a   :  { %v609_v42 = vld [vmem:[#allocation7 + $0xd4] sm:$0xf0]  ;;  %448 = vmatmul.msk.bf16.vlgmr.msra.gmra.mxu0 %vm109_vm0, %v78_v26  ;;  %v493_v44 = vor.u32 %v593_v39, %v492_v38  ;;  %v494_v45 = vld [vmem:[#allocation7 + $0x58] sm:$0xf0]  ;;  %v608_v46 = vld [vmem:[#allocation7 + $0xd4] sm:$0xf] }
  0x1b   :  { %369 = vmatpush.bf16.msrb.mxu0 %v513_v22  ;;  %344 = vmatpush.bf16.msra.mxu2 %v501_v31  ;;  %v558_v47 = vld [vmem:[#allocation7 + $0xd8] sm:$0xf0]  ;;  %v557_v48 = vor.u32 %v609_v42, %v556_v41  ;;  %v484_v49 = vld [vmem:[#allocation7 + $0x40] sm:$0xf]  ;;  %v591_v50 = vld [vmem:[#allocation7 + $0x44] sm:$0xf0]  ;;  %v497_v51 = vor.u32 %v592_v43, %v494_v45 }
  0x1c   :  { %382 = vmatpush.bf16.msrb.mxu1 %v577_v27  ;;  %357 = vmatpush.bf16.msra.mxu3 %v565_v32  ;;  %v548_v52 = vld [vmem:[#allocation7 + $0xc0] sm:$0xf]  ;;  %v607_v53 = vld [vmem:[#allocation7 + $0xc4] sm:$0xf0]  ;;  %v561_v54 = vor.u32 %v608_v46, %v558_v47  ;;  %v590_v55 = vld [vmem:[#allocation7 + $0x44] sm:$0xf]  ;;  %v485_v57 = vor.u32 %v591_v50, %v484_v49 }
  0x1d   :  { %449 = vmatmul.msk.bf16.vlgmr.msra.gmra.mxu1 %vm109_vm0, %v78_v26  ;;  %v486_v56 = vld [vmem:[#allocation7 + $0x48] sm:$0xf0]  ;;  %v606_v58 = vld [vmem:[#allocation7 + $0xc4] sm:$0xf]  ;;  %v549_v60 = vor.u32 %v607_v53, %v548_v52  ;;  %v476_v61 = vld [vmem:[#allocation7 + $0x30] sm:$0xf] }
  0x1e   :  { %v550_v59 = vld [vmem:[#allocation7 + $0xc8] sm:$0xf0]  ;;  %v589_v62 = vld [vmem:[#allocation7 + $0x34] sm:$0xf0]  ;;  %v489_v63 = vor.u32 %v590_v55, %v486_v56  ;;  %v540_v0 = vld [vmem:[#allocation7 + $0xb0] sm:$0xf] }
  0x1f   :  { %370 = vmatpush.bf16.msrb.mxu0 %v505_v36  ;;  %345 = vmatpush.bf16.msra.mxu2 %v493_v44  ;;  %v605_v1 = vld [vmem:[#allocation7 + $0xb4] sm:$0xf0]  ;;  %v553_v2 = vor.u32 %v606_v58, %v550_v59  ;;  %v588_v3 = vld [vmem:[#allocation7 + $0x34] sm:$0xf]  ;;  %v478_v4 = vld [vmem:[#allocation7 + $0x38] sm:$0xf0]  ;;  %v477_v5 = vor.u32 %v589_v62, %v476_v61 }
  0x20   :  { %383 = vmatpush.bf16.msrb.mxu1 %v569_v40  ;;  %358 = vmatpush.bf16.msra.mxu3 %v557_v48  ;;  %v604_v6 = vld [vmem:[#allocation7 + $0xb4] sm:$0xf]  ;;  %v542_v7 = vld [vmem:[#allocation7 + $0xb8] sm:$0xf0]  ;;  %v468_v8 = vld [vmem:[#allocation7 + $0x20] sm:$0xf]  ;;  %v541_v9 = vor.u32 %v605_v1, %v540_v0  ;;  %v481_v12 = vor.u32 %v588_v3, %v478_v4 }
  0x21   :  { %v587_v10 = vld [vmem:[#allocation7 + $0x24] sm:$0xf0]  ;;  %v532_v13 = vld [vmem:[#allocation7 + $0xa0] sm:$0xf]  ;;  %v545_v15 = vor.u32 %v604_v6, %v542_v7  ;;  %v586_v16 = vld [vmem:[#allocation7 + $0x24] sm:$0xf] }
  0x22   :  { %v603_v14 = vld [vmem:[#allocation7 + $0xa4] sm:$0xf0]  ;;  %v470_v17 = vld [vmem:[#allocation7 + $0x28] sm:$0xf0]  ;;  %v469_v18 = vor.u32 %v587_v10, %v468_v8  ;;  %v602_v19 = vld [vmem:[#allocation7 + $0xa4] sm:$0xf] }
  0x23   :  { %371 = vmatpush.bf16.msrb.mxu0 %v497_v51  ;;  %346 = vmatpush.bf16.msra.mxu2 %v485_v57  ;;  %v534_v20 = vld [vmem:[#allocation7 + $0xa8] sm:$0xf0]  ;;  %v533_v21 = vor.u32 %v603_v14, %v532_v13  ;;  %v473_v22 = vor.u32 %v586_v16, %v470_v17  ;;  %v460_v24 = vld [vmem:[#allocation7 + $0x10] sm:$0xf]  ;;  %v585_v25 = vld [vmem:[#allocation7 + $0x14] sm:$0xf0] }
  0x24   :  { %384 = vmatpush.bf16.msrb.mxu1 %v561_v54  ;;  %359 = vmatpush.bf16.msra.mxu3 %v549_v60  ;;  %v537_v23 = vor.u32 %v602_v19, %v534_v20  ;;  %v461_v26 = vor.u32 %v585_v25, %v460_v24  ;;  %v524_v27 = vld [vmem:[#allocation7 + $0x90] sm:$0xf]  ;;  %v601_v28 = vld [vmem:[#allocation7 + $0x94] sm:$0xf0]  ;;  %v584_v29 = vld [vmem:[#allocation7 + $0x14] sm:$0xf] }
  0x25   :  { %v525_v30 = vor.u32 %v601_v28, %v524_v27  ;;  %v462_v31 = vld [vmem:[#allocation7 + $0x18] sm:$0xf0]  ;;  %v600_v32 = vld [vmem:[#allocation7 + $0x94] sm:$0xf]  ;;  %v452_v36 = vld [vmem:[#allocation7] sm:$0xf] }
  0x26   :  { %v526_v33 = vld [vmem:[#allocation7 + $0x98] sm:$0xf0]  ;;  %v465_v34 = vor.u32 %v584_v29, %v462_v31  ;;  %v583_v37 = vld [vmem:[#allocation7 + $0x4] sm:$0xf0]  ;;  %v516_v38 = vld [vmem:[#allocation7 + $0x80] sm:$0xf] }
  0x27   :  { %372 = vmatpush.bf16.msrb.mxu0 %v489_v63  ;;  %347 = vmatpush.bf16.msra.mxu2 %v477_v5  ;;  %v529_v35 = vor.u32 %v600_v32, %v526_v33  ;;  %v453_v39 = vor.u32 %v583_v37, %v452_v36  ;;  %v599_v40 = vld [vmem:[#allocation7 + $0x84] sm:$0xf0]  ;;  %v582_v41 = vld [vmem:[#allocation7 + $0x4] sm:$0xf]  ;;  %v454_v42 = vld [vmem:[#allocation7 + $0x8] sm:$0xf0] }
  0x28   :  { %385 = vmatpush.bf16.msrb.mxu1 %v553_v2  ;;  %360 = vmatpush.bf16.msra.mxu3 %v541_v9  ;;  %v517_v43 = vor.u32 %v599_v40, %v516_v38  ;;  %v457_v44 = vor.u32 %v582_v41, %v454_v42  ;;  %v598_v45 = vld [vmem:[#allocation7 + $0x84] sm:$0xf]  ;;  %v518_v46 = vld [vmem:[#allocation7 + $0x88] sm:$0xf0]  ;;  %v83_v48 = vld [vmem:[%s784_s2] sm:$0x3] }
  0x29   :  { %v521_v47 = vor.u32 %v598_v45, %v518_v46  ;;  %v85_v49 = vperm.slane %v83_v48, 0  ;;  %v86_v50 = vperm.slane %v83_v48, 1  ;;  %v177_v63 = vld [vmem:[%s786_s4] sm:$0x3]  ;;  %vm424_vm1 = vcmask 7168  }
  0x2a   :  { %v180_v0 = vperm.slane %v177_v63, 1  ;;  %v179_v5 = vperm.slane %v177_v63, 0  ;;  %v619_v24 = vld [vmem:[%s788_s6] ss:$0 sm:$0xff] }
  0x2b   :  { %373 = vmatpush.bf16.msrb.mxu0 %v481_v12  ;;  %348 = vmatpush.bf16.msra.mxu2 %v469_v18  ;;  %v399_v12 = vld [vmem:[%s787_s5] sm:$0x3] }
  0x2c   :  { %386 = vmatpush.bf16.msrb.mxu1 %v545_v15  ;;  %361 = vmatpush.bf16.msra.mxu3 %v533_v21  ;;  %v401_v17 = vperm.slane %v399_v12, 0  ;;  %v402_v18 = vperm.slane %v399_v12, 1  ;;  %v620_v29 = vld [vmem:[#allocation2] ss:$0 sm:$0xff] }
  0x2f   :  { %374 = vmatpush.bf16.msrb.mxu0 %v473_v22  ;;  %349 = vmatpush.bf16.msra.mxu2 %v461_v26  ;;  %v414_v26 = vmul.f32 %v619_v24, %v759_v11 }
  0x30   :  { %387 = vmatpush.bf16.msrb.mxu1 %v537_v23  ;;  %362 = vmatpush.bf16.msra.mxu3 %v525_v30 }
  0x31   :  { %v415_v27 = vsel %vm109_vm0, %v414_v26, 0.0 }
  0x33   :  { %375 = vmatpush.bf16.msrb.mxu0 %v465_v34  ;;  %350 = vmatpush.bf16.msra.mxu2 %v453_v39 }
  0x34   :  { %388 = vmatpush.bf16.msrb.mxu1 %v529_v35  ;;  %363 = vmatpush.bf16.msra.mxu3 %v517_v43 }
  0x37   :  { %376 = vmatpush.bf16.msrb.mxu0 %v457_v44 }
  0x38   :  { %389 = vmatpush.bf16.msrb.mxu1 %v521_v47 }
  0x97   :  { %v122_v51 = vpop.f32.mrf.mxu0 }
  0x98   :  { %v123_v52 = vadd.f32 %v122_v51, %v85_v49 }
  0x9a   :  { %v135_v53 = vpop.f32.mrf.mxu1  ;;  %v139_v55 = vmul.f32 0.01, %v123_v52 }
  0x9b   :  { %v136_v54 = vadd.f32 %v135_v53, %v86_v50 }
  0x9c   :  { %v141_v57 = vmax.f32 %v123_v52, %v139_v55 }
  0x9d   :  { %v140_v56 = vmul.f32 0.01, %v136_v54 }
  0x9e   :  { %v143_v59 = vpack.c.bf16 %v141_v57, %v141_v57 }
  0x9f   :  { %v142_v58 = vmax.f32 %v136_v54, %v140_v56  ;;  %v124_v60 = vpop.f32.mrf.mxu0 }
  0xa0   :  { %351 = vmatmul.bf16.vlgmr.msra.gmra.mxu2 %v143_v59  ;;  %377 = vmatmul.bf16.vlgmr.msrb.gmra.mxu0 %v143_v59 }
  0xa1   :  { %v144_v61 = vpack.c.bf16 %v142_v58, %v142_v58 }
  0xa2   :  { %v137_v62 = vpop.f32.mrf.mxu1 }
  0xa3   :  { %364 = vmatmul.bf16.vlgmr.msra.gmra.mxu3 %v144_v61  ;;  %390 = vmatmul.bf16.vlgmr.msrb.gmra.mxu1 %v144_v61 }
 0x11d   :  { %v378_v1 = vpop.f32.mrf.mxu0 }
 0x11e   :  { %v379_v2 = vadd.f32 %v378_v1, %v180_v0 }
 0x120   :  { %v391_v3 = vpop.f32.mrf.mxu1 }
 0x121   :  { %v392_v4 = vadd.f32 %v391_v3, %v379_v2 }
 0x123   :  { %v352_v6 = vpop.f32.mrf.mxu2  ;;  %v396_v7 = vmul.f32 0.01, %v392_v4 }
 0x124   :  { %v353_v8 = vadd.f32 %v352_v6, %v179_v5 }
 0x125   :  { %v380_v10 = vpop.f32.mrf.mxu0  ;;  %v398_v15 = vmax.f32 %v392_v4, %v396_v7 }
 0x126   :  { %v365_v9 = vpop.f32.mrf.mxu3 }
 0x127   :  { %v366_v13 = vadd.f32 %v365_v9, %v353_v8  ;;  %v406_v23 = vmul.f32 %v402_v18, %v398_v15 }
 0x128   :  { %v393_v14 = vpop.f32.mrf.mxu1 }
 0x129   :  { %v395_v16 = vmul.f32 0.01, %v366_v13 }
 0x12b   :  { %v397_v19 = vmax.f32 %v366_v13, %v395_v16  ;;  %v354_v20 = vpop.f32.mrf.mxu2 }
 0x12d   :  { %v405_v22 = vmul.f32 %v401_v17, %v397_v19 }
 0x12e   :  { %v367_v21 = vpop.f32.mrf.mxu3 }
 0x12f   :  { %v407_v25 = vadd.f32 %v406_v23, %v405_v22 }
 0x131   :  { %408 = vadd.xlane.f32.xlu0 %v407_v25 }
 0x139   :  { %416 = vadd.xlane.f32.xlu0 %v415_v27 }
 0x1a4   :  { %v409_v28 = vpop.xlane.xlu0 %408 }
 0x1ac   :  { %v417_v30 = vpop.xlane.xlu0 %416 }
 0x1ad   :  { %v418_v31 = vadd.f32 %v417_v30, %v409_v28 }
 0x1af   :  { %v423_v32 = vadd.f32 %v620_v29, %v418_v31 }
 0x1b1   :  { %425 = vst.msk [vmem:[%s790_s8] sm:$0xff] %vm424_vm1, %v423_v32 }
 0x1b2   :  { %430 = vsyncpa [#allocation4], 1 }
 0x1b3   :  { %431 = vsyncpa [#allocation6], 1 }

</bundles_post_ra>
